<compile_context>
chip_gen: v5e
topology: v5e:2x2
jax: 0.10.0
libtpu: 0.0.40
codegen_flags: <defaults>
</compile_context>

<pallas_src>
import numpy as np
import jax
import jax.numpy as jnp
from jax.experimental import pallas as pl
from jax.experimental.pallas import tpu as pltpu

# ----------------------------- configuration -----------------------------
N, C, H, W = 2, 3, 16, 16          # batch, img_color, spatial (img_color must be 3 for cifar10 stats)
HW = H * W
CHW = C * HW                        # 768 = flattened feature axis (channel-major, lane-dense)
K = 10                              # number of classes for the synthetic classifier head
EPSILON = 1e-7                      # Keras epsilon, as in the original script

CIFAR10_MEAN = (0.4914, 0.4822, 0.4465)
CIFAR10_STD = (0.2023, 0.1994, 0.201)

# TODO(synk): the original MyModel wraps an arbitrary pretrained `model`; here it is stood in
# by a deterministic linear head (weights passed in), since the real network is not defined
# in the spec.


# ------------------------------- kernel ----------------------------------
def adv_classify_kernel(x_ref, mask_tanh_ref, pattern_tanh_ref, w_ref, b_ref,
                        logits_ref, mask_out_ref):
    # x_ref:            (N, CHW)    input image, channel-major flattened, f32
    # mask_tanh_ref:    (1, HW)     raw mask parameter (single channel), f32
    # pattern_tanh_ref: (1, CHW)    raw pattern parameter, flattened C*HW, f32
    # w_ref:            (CHW, K)    normalization-folded classifier weight, bf16
    # b_ref:            (1, K)      normalization-folded bias, f32
    # logits_ref:       (N, K)      f32
    # mask_out_ref:     (1, HW)     single-channel mask in [0, 1], f32
    inv = 1.0 / (2.0 - EPSILON)

    mask_1hw = jnp.tanh(mask_tanh_ref[...]) * inv + 0.5           # (1, HW), one EUP pass
    pattern01 = jnp.tanh(pattern_tanh_ref[...]) * inv + 0.5       # (1, CHW)

    # channel-tile the mask with a lane concat (XLU slot, not EUP/VPU)
    mask_chw = jnp.concatenate([mask_1hw] * C, axis=-1)           # (1, CHW)

    # trigger blend in [0, 1] pixel scale (the *255 / /255 round trip cancels exactly),
    # written in FMA form: x + m * (p - x) == (1 - m) * x + m * p
    x = x_ref[...]                                                # (N, CHW)
    x_adv = x + mask_chw * (pattern01 - x)                        # (N, CHW)

    # classifier head with cifar10 normalization pre-folded into (W', b');
    # bf16 operands, f32 accumulation on the MXU.
    logits_ref[...] = (
        jnp.dot(x_adv.astype(jnp.bfloat16), w_ref[...],
                preferred_element_type=jnp.float32)
        + b_ref[...]
    )

    mask_out_ref[...] = mask_1hw


# ------------------------------- wrapper ----------------------------------
def _vmem_spec():
    return pl.BlockSpec(memory_space=pltpu.MemorySpace.VMEM)


@jax.jit
def my_model_forward(x_nchw, mask_tanh_hw, pattern_tanh_chw, w_chwk, b_k):
    # channel-major flattening: feature index f = c * HW + hw  (matches reference reshape)
    x_flat = x_nchw.reshape(N, CHW).astype(jnp.float32)
    mask_tanh_row = mask_tanh_hw.reshape(1, HW).astype(jnp.float32)
    pattern_tanh_row = pattern_tanh_chw.reshape(1, CHW).astype(jnp.float32)

    # fold the cifar10 normalization into the head (exact algebra):
    #   ((x - mean) * inv_std) @ W + b == x @ (inv_std[:, None] * W) + (b - (mean*inv_std) @ W)
    mean_f = jnp.repeat(jnp.asarray(CIFAR10_MEAN, jnp.float32), HW)          # (CHW,)
    inv_std_f = jnp.repeat(1.0 / jnp.asarray(CIFAR10_STD, jnp.float32), HW)  # (CHW,)
    w_flat = w_chwk.reshape(CHW, K).astype(jnp.float32)
    w_fold = (inv_std_f[:, None] * w_flat).astype(jnp.bfloat16)              # (CHW, K) bf16
    b_fold = (b_k.astype(jnp.float32) - (mean_f * inv_std_f) @ w_flat).reshape(1, K)

    logits, mask_flat = pl.pallas_call(
        adv_classify_kernel,
        out_shape=(
            jax.ShapeDtypeStruct((N, K), jnp.float32),
            jax.ShapeDtypeStruct((1, HW), jnp.float32),
        ),
        in_specs=[_vmem_spec() for _ in range(5)],
        out_specs=(_vmem_spec(), _vmem_spec()),
    )(x_flat, mask_tanh_row, pattern_tanh_row, w_fold, b_fold)

    mask_upsample = jnp.broadcast_to(mask_flat.reshape(1, 1, H, W),
                                     (1, C, H, W))                # matches torch (1, C, H, W)
    return logits, mask_upsample


# ------------------------------ reference ---------------------------------
def reference_forward(x_nchw, mask_tanh_hw, pattern_tanh_chw, w_chwk, b_k):
    # faithful replica of the original PyTorch forward (including the 255 round trip
    # and the (x - mean) / std division).
    inv = 1.0 / (2.0 - EPSILON)
    mask = jnp.tanh(mask_tanh_hw) * inv + 0.5                     # (H, W)
    mask = jnp.broadcast_to(mask[None], (C, H, W))[None]          # (1, C, H, W)
    pattern = (jnp.tanh(pattern_tanh_chw) * inv + 0.5) * 255.0    # (C, H, W)
    x_raw = x_nchw * 255.0
    x_adv_raw = (1.0 - mask) * x_raw + mask * pattern[None]
    mean = jnp.asarray(CIFAR10_MEAN, jnp.float32)[None, :, None, None]
    std = jnp.asarray(CIFAR10_STD, jnp.float32)[None, :, None, None]
    x_adv = (x_adv_raw / 255.0 - mean) / std
    x_flat = x_adv.reshape(N, CHW)
    w_flat = w_chwk.reshape(CHW, K)
    return x_flat @ w_flat + b_k, mask


# -------------------------------- main -------------------------------------
if __name__ == "__main__":
    key = jax.random.PRNGKey(0)
    k_x, k_m, k_p, k_w, k_b = jax.random.split(key, 5)

    # input is already cifar10-preprocessed (as in the original pipeline)
    x = jax.random.normal(k_x, (N, C, H, W), jnp.float32)
    mask_tanh = 0.1 * jax.random.normal(k_m, (H, W), jnp.float32)
    pattern_tanh = 0.1 * jax.random.normal(k_p, (C, H, W), jnp.float32)
    w = 0.05 * jax.random.normal(k_w, (C, HW, K), jnp.float32)
    b = 0.01 * jax.random.normal(k_b, (K,), jnp.float32)

    logits, mask_up = my_model_forward(x, mask_tanh, pattern_tanh, w, b)
    logits = jax.block_until_ready(logits)
    mask_up = jax.block_until_ready(mask_up)

    ref_logits, ref_mask = reference_forward(x, mask_tanh, pattern_tanh, w, b)

    # Logit tolerance covers (a) the exact-but-reordered normalization fold and removed
    # 255 round trip, and (b) bf16 MXU operand rounding over a K=768 contraction
    # (expected |err| ~1e-2 vs logit scale ~5).
    assert np.allclose(np.asarray(logits), np.asarray(ref_logits), rtol=1e-2, atol=5e-2)
    assert np.allclose(np.asarray(mask_up), np.asarray(ref_mask), rtol=1e-5, atol=1e-5)

    print("KERNEL_OK")
</pallas_src>

<mosaic_0001>
module attributes {stable_mosaic.version = 11 : i64} {
  func.func @adv_classify_kernel(%arg0: memref<2x768xf32, #tpu.memory_space<vmem>>, %arg1: memref<1x256xf32, #tpu.memory_space<vmem>>, %arg2: memref<1x768xf32, #tpu.memory_space<vmem>>, %arg3: memref<768x10xbf16, #tpu.memory_space<vmem>>, %arg4: memref<1x10xf32, #tpu.memory_space<vmem>>, %arg5: memref<2x10xf32, #tpu.memory_space<vmem>>, %arg6: memref<1x256xf32, #tpu.memory_space<vmem>>) attributes {dimension_semantics = [], scalar_prefetch = 0 : i64, scratch_operands = 0 : i64, tpu.core_type = #tpu.core_type<tc>} {
    %c0 = arith.constant 0 : index
    %c0_0 = arith.constant 0 : index
    %0 = vector.load %arg1[%c0, %c0_0] : memref<1x256xf32, #tpu.memory_space<vmem>>, vector<1x256xf32>
    %1 = math.tanh %0 : vector<1x256xf32>
    %cst = arith.constant 5.000000e-01 : f32
    %2 = vector.broadcast %cst : f32 to vector<1x256xf32>
    %3 = arith.mulf %1, %2 : vector<1x256xf32>
    %cst_1 = arith.constant 5.000000e-01 : f32
    %4 = vector.broadcast %cst_1 : f32 to vector<1x256xf32>
    %5 = arith.addf %3, %4 : vector<1x256xf32>
    %c0_2 = arith.constant 0 : index
    %c0_3 = arith.constant 0 : index
    %6 = vector.load %arg2[%c0_2, %c0_3] : memref<1x768xf32, #tpu.memory_space<vmem>>, vector<1x768xf32>
    %7 = math.tanh %6 : vector<1x768xf32>
    %cst_4 = arith.constant 5.000000e-01 : f32
    %8 = vector.broadcast %cst_4 : f32 to vector<1x768xf32>
    %9 = arith.mulf %7, %8 : vector<1x768xf32>
    %cst_5 = arith.constant 5.000000e-01 : f32
    %10 = vector.broadcast %cst_5 : f32 to vector<1x768xf32>
    %11 = arith.addf %9, %10 : vector<1x768xf32>
    %12 = tpu.concatenate %5, %5, %5 in 1 : vector<1x256xf32>, vector<1x256xf32>, vector<1x256xf32> -> vector<1x768xf32>
    %c0_6 = arith.constant 0 : index
    %c0_7 = arith.constant 0 : index
    %13 = vector.load %arg0[%c0_6, %c0_7] : memref<2x768xf32, #tpu.memory_space<vmem>>, vector<2x768xf32>
    %14 = vector.broadcast %11 : vector<1x768xf32> to vector<2x768xf32>
    %15 = arith.subf %14, %13 : vector<2x768xf32>
    %16 = vector.broadcast %12 : vector<1x768xf32> to vector<2x768xf32>
    %17 = arith.mulf %16, %15 : vector<2x768xf32>
    %18 = arith.addf %13, %17 : vector<2x768xf32>
    %19 = arith.truncf %18 : vector<2x768xf32> to vector<2x768xbf16>
    %c0_8 = arith.constant 0 : index
    %c0_9 = arith.constant 0 : index
    %20 = vector.load %arg3[%c0_8, %c0_9] : memref<768x10xbf16, #tpu.memory_space<vmem>>, vector<768x10xbf16>
    %cst_10 = arith.constant dense<0.000000e+00> : vector<2x10xf32>
    %21 = tpu.matmul %19, %20, %cst_10 {dimension_numbers = #tpu.dot_dimension_numbers<[1], [0], [0], [1], [0, 0, 1, 1], [], []>} : vector<2x768xbf16>, vector<768x10xbf16>, vector<2x10xf32> -> vector<2x10xf32>
    %c0_11 = arith.constant 0 : index
    %c0_12 = arith.constant 0 : index
    %22 = vector.load %arg4[%c0_11, %c0_12] : memref<1x10xf32, #tpu.memory_space<vmem>>, vector<1x10xf32>
    %23 = vector.broadcast %22 : vector<1x10xf32> to vector<2x10xf32>
    %24 = arith.addf %21, %23 : vector<2x10xf32>
    %c0_13 = arith.constant 0 : index
    %c0_14 = arith.constant 0 : index
    %25 = vector.load %arg5[%c0_13, %c0_14] : memref<2x10xf32, #tpu.memory_space<vmem>>, vector<2x10xf32>
    tpu.vector_store %arg5[%c0_13, %c0_14], %24 {strides = array<i32>} : memref<2x10xf32, #tpu.memory_space<vmem>>, vector<2x10xf32>,
    %c0_15 = arith.constant 0 : index
    %c0_16 = arith.constant 0 : index
    %26 = vector.load %arg6[%c0_15, %c0_16] : memref<1x256xf32, #tpu.memory_space<vmem>>, vector<1x256xf32>
    tpu.vector_store %arg6[%c0_15, %c0_16], %5 {strides = array<i32>} : memref<1x256xf32, #tpu.memory_space<vmem>>, vector<1x256xf32>,
    return
  }
}

</mosaic_0001>

<bundles_post_ra>
// kernel: mul.6
= control target key start
LH: loop header
LB: loop body
LE: loop exit
PB: predicated region body
PF: predicated region fallthrough
CT: control target
= control target key end

     0   :  { %s40_s0 = inlined_call_operand.vmem [shape: f32[3,256], index: 0, kind: input, shape index: {}]   ;;  %s41_s1 = inlined_call_operand.vmem [shape: f32[768], index: 1, kind: output, shape index: {}]  }
   0x1   :  { %v16_v0 = vld [vmem:[%s40_s0 + $0x4] sm:$0xf]  ;;  %v8_v1 = vld [vmem:[%s40_s0] sm:$0xf] }
   0x2   :  { %7 = vst [vmem:[#allocation0 + $0x8] sm:$0xf] %v16_v0 }
   0x3   :  { %9 = vst [vmem:[#allocation0] sm:$0xf] %v8_v1 }
   0x9   :  { %v13_v2 = vld [vmem:[#allocation0 + $0x8] sm:$0x7]  }
   0xa   :  { %v10_v3 = vld [vmem:[#allocation0] sm:$0x7]   ;;  %17 = vst [vmem:[%s41_s1 + $0x1] ss:$2 sm:$0x7] %v13_v2  }
   0xb   :  { %11 = vst [vmem:[%s41_s1] ss:$2 sm:$0x7] %v10_v3  }

// kernel: mul.9
= control target key start
LH: loop header
LB: loop body
LE: loop exit
PB: predicated region body
PF: predicated region fallthrough
CT: control target
= control target key end

     0   :  { %s34_s0 = inlined_call_operand.vmem [shape: f32[768], index: 0, kind: input, shape index: {}]   ;;  %s35_s1 = inlined_call_operand.vmem [shape: f32[768], index: 1, kind: input, shape index: {}]   ;;  %s36_s2 = inlined_call_operand.vmem [shape: f32[768], index: 2, kind: output, shape index: {}]  }
   0x1   :  { %v3_v0 = vld [vmem:[%s34_s0] sm:$0x3f] }
   0x2   :  { %v4_v1 = vld [vmem:[%s35_s1] sm:$0x3f] }
   0x3   :  { %v7_v2 = vmul.f32 %v4_v1, %v3_v0 }
   0x5   :  { %9 = vst [vmem:[%s36_s2] sm:$0xff] %v7_v2 }

// kernel: my_model_forward.1
= control target key start
LH: loop header
LB: loop body
LE: loop exit
PB: predicated region body
PF: predicated region fallthrough
CT: control target
= control target key end

     0   :  { %s1108_s0 = inlined_call_operand.vmem [shape: f32[2,768], index: 0, kind: input, shape index: {}]   ;;  %s1109_s1 = inlined_call_operand.vmem [shape: f32[1,256], index: 1, kind: input, shape index: {}]   ;;  %s1110_s2 = inlined_call_operand.vmem [shape: f32[1,768], index: 2, kind: input, shape index: {}]   ;;  %s1111_s3 = inlined_call_operand.vmem [shape: bf16[768,10], index: 3, kind: input, shape index: {}]   ;;  %s1112_s4 = inlined_call_operand.vmem [shape: f32[1,10], index: 4, kind: input, shape index: {}]   ;;  %s1113_s5 = inlined_call_operand.hbm [shape: f32[2,10], index: 5, kind: output, shape index: {0}]   ;;  %s1114_s6 = inlined_call_operand.vmem [shape: f32[1,256], index: 6, kind: output, shape index: {1}]  }
   0x1   :  { %v818_v0 = vld [vmem:[%s1111_s3 + $0x38] sm:$0xff]  ;;  %v817_v2 = vld [vmem:[%s1111_s3 + $0x30] sm:$0xff]  ;;  %v816_v8 = vld [vmem:[%s1111_s3 + $0x28] sm:$0xff] }
   0x2   :  { %v826_v1 = vld [vmem:[%s1111_s3 + $0x78] sm:$0xff]  ;;  %514 = vmatpush.bf16.msra.mxu0 %v818_v0  ;;  %v825_v3 = vld [vmem:[%s1111_s3 + $0x70] sm:$0xff]  ;;  %v824_v9 = vld [vmem:[%s1111_s3 + $0x68] sm:$0xff] }
   0x3   :  { %527 = vmatpush.bf16.msra.mxu1 %v826_v1  ;;  %v834_v4 = vld [vmem:[%s1111_s3 + $0xb8] sm:$0xff]  ;;  %v833_v6 = vld [vmem:[%s1111_s3 + $0xb0] sm:$0xff]  ;;  %v832_v10 = vld [vmem:[%s1111_s3 + $0xa8] sm:$0xff] }
   0x4   :  { %v842_v5 = vld [vmem:[%s1111_s3 + $0xf8] sm:$0xff]  ;;  %540 = vmatpush.bf16.msra.mxu2 %v834_v4  ;;  %v841_v7 = vld [vmem:[%s1111_s3 + $0xf0] sm:$0xff]  ;;  %v840_v11 = vld [vmem:[%s1111_s3 + $0xe8] sm:$0xff] }
   0x5   :  { %553 = vmatpush.bf16.msra.mxu3 %v842_v5  ;;  %v815_v12 = vld [vmem:[%s1111_s3 + $0x20] sm:$0xff]  ;;  %v989_v19 = vld [vmem:[%s1108_s0 + $0x8] sm:$0xf] }
   0x6   :  { %515 = vmatpush.bf16.msra.mxu0 %v817_v2  ;;  %v823_v13 = vld [vmem:[%s1111_s3 + $0x60] sm:$0xff] }
   0x7   :  { %528 = vmatpush.bf16.msra.mxu1 %v825_v3  ;;  %v831_v14 = vld [vmem:[%s1111_s3 + $0xa0] sm:$0xff] }
   0x8   :  { %541 = vmatpush.bf16.msra.mxu2 %v833_v6  ;;  %v839_v15 = vld [vmem:[%s1111_s3 + $0xe0] sm:$0xff] }
   0x9   :  { %554 = vmatpush.bf16.msra.mxu3 %v841_v7  ;;  %v23_v16 = vld [vmem:[%s1109_s1] sm:$0x3] }
   0xa   :  { %516 = vmatpush.bf16.msra.mxu0 %v816_v8  ;;  %v27_v17 = vld [vmem:[%s1110_s2] sm:$0x3f]  ;;  %861 = vtanh.f32 %v23_v16 }
   0xb   :  { %529 = vmatpush.bf16.msra.mxu1 %v824_v9  ;;  %v984_v18 = vld [vmem:[%s1108_s0] sm:$0xff]  ;;  %863 = vtanh.f32 %v27_v17 }
   0xc   :  { %542 = vmatpush.bf16.msra.mxu2 %v832_v10  ;;  %53 = vst [vmem:[#allocation1] ss:$4 sm:$0xff] %v984_v18 }
   0xd   :  { %555 = vmatpush.bf16.msra.mxu3 %v840_v11 }
   0xe   :  { %12 = vsyncpa [#allocation3], 0  ;;  %517 = vmatpush.bf16.msra.mxu0 %v815_v12  ;;  %v814_v20 = vld [vmem:[%s1111_s3 + $0x18] sm:$0xff]  ;;  %55 = vst [vmem:[#allocation1 + $0x20] ss:$4 sm:$0xff] %v989_v19  ;;  %v594_v24 = vlaneseq  ;;  %v813_v26 = vld [vmem:[%s1111_s3 + $0x10] sm:$0xff] }
   0xf   :  { %530 = vmatpush.bf16.msra.mxu1 %v823_v13  ;;  %v822_v21 = vld [vmem:[%s1111_s3 + $0x58] sm:$0xff]  ;;  %v821_v27 = vld [vmem:[%s1111_s3 + $0x50] sm:$0xff]  ;;  %v812_v33 = vld [vmem:[%s1111_s3 + $0x8] sm:$0xff]  ;;  %vm92_vm1 = vcmask 1041408   ;;  %vm94_vm2 = vcmask 1045508   ;;  %vm96_vm3 = vcmask 1043456  }
  0x10   :  { %543 = vmatpush.bf16.msra.mxu2 %v831_v14  ;;  %v830_v22 = vld [vmem:[%s1111_s3 + $0x98] sm:$0xff]  ;;  %v862_v25 = vpop.eup %861  ;;  %v829_v30 = vld [vmem:[%s1111_s3 + $0x90] sm:$0xff]  ;;  %vm1020_vm0 = vcmp.lt.s32.totalorder %v594_v24, 256  ;;  %v820_v38 = vld [vmem:[%s1111_s3 + $0x48] sm:$0xff]  ;;  %vm592_vm4 = vcmask 74752  }
  0x11   :  { %556 = vmatpush.bf16.msra.mxu3 %v839_v15  ;;  %v838_v23 = vld [vmem:[%s1111_s3 + $0xd8] sm:$0xff]  ;;  %v864_v28 = vpop.eup %863  ;;  %v25_v29 = vmul.f32 0.5, %v862_v25  ;;  %v837_v31 = vld [vmem:[%s1111_s3 + $0xd0] sm:$0xff]  ;;  %v828_v39 = vld [vmem:[%s1111_s3 + $0x88] sm:$0xff] }
  0x12   :  { %518 = vmatpush.bf16.msra.mxu0 %v814_v20  ;;  %v29_v32 = vmul.f32 0.5, %v864_v28  ;;  %v836_v42 = vld [vmem:[%s1111_s3 + $0xc8] sm:$0xff]  ;;  %v811_v50 = vld [vmem:[%s1111_s3] sm:$0xff]  ;;  %v850_v61 = vld [vmem:[%s1111_s3 + $0x138] sm:$0xff] }
  0x13   :  { %531 = vmatpush.bf16.msra.mxu1 %v822_v21  ;;  %v26_v34 = vadd.f32 0.5, %v25_v29  ;;  %v56_v35 = vld.sshfl [vmem:[#allocation1] sm:$0xff pattern:$0x73625140]  ;;  %v858_v62 = vld [vmem:[%s1111_s3 + $0x178] sm:$0xff]  ;;  %v849_v12 = vld [vmem:[%s1111_s3 + $0x130] sm:$0xff] }
  0x14   :  { %544 = vmatpush.bf16.msra.mxu2 %v830_v22  ;;  %v57_v36 = vld.sshfl [vmem:[#allocation1 + $0x8] sm:$0xff pattern:$0x73625140]  ;;  %v30_v40 = vadd.f32 0.5, %v29_v32  ;;  %v819_v51 = vld [vmem:[%s1111_s3 + $0x40] sm:$0xff]  ;;  %v857_v13 = vld [vmem:[%s1111_s3 + $0x170] sm:$0xff] }
  0x15   :  { %557 = vmatpush.bf16.msra.mxu3 %v838_v23  ;;  %v58_v41 = vld.sshfl [vmem:[#allocation1 + $0x10] sm:$0xff pattern:$0x73625140]  ;;  %v32_v43 = vperm.slane %v26_v34, 0  ;;  %v33_v44 = vperm.slane %v26_v34, 1  ;;  %v827_v5 = vld [vmem:[%s1111_s3 + $0x80] sm:$0xff] }
  0x16   :  { %519 = vmatpush.bf16.msra.mxu0 %v813_v26  ;;  %v59_v45 = vld.sshfl [vmem:[#allocation1 + $0x18] sm:$0xff pattern:$0x73625140]  ;;  %v39_v46 = vperm.slane %v30_v40, 0  ;;  %v40_v47 = vperm.slane %v30_v40, 1  ;;  %v41_v48 = vperm.slane %v30_v40, 2 }
  0x17   :  { %532 = vmatpush.bf16.msra.mxu1 %v821_v27  ;;  %v42_v49 = vperm.slane %v30_v40, 3  ;;  %598 = vst.msk [vmem:[%s1114_s6] sm:$0x3] %vm1020_vm0, %v26_v34  ;;  %v74_v52 = vperm.slane %v32_v43, 0  ;;  %v75_v53 = vperm.slane %v33_v44, 0  ;;  %v43_v54 = vperm.slane %v30_v40, 4 }
  0x18   :  { %545 = vmatpush.bf16.msra.mxu2 %v829_v30  ;;  %v44_v55 = vperm.slane %v30_v40, 5  ;;  %v68_v56 = vsub.f32 %v39_v46, %v56_v35  ;;  %v69_v57 = vsub.f32 %v40_v47, %v57_v36  ;;  %v70_v58 = vsub.f32 %v41_v48, %v58_v41  ;;  %v60_v59 = vld.sshfl [vmem:[#allocation1 + $0x20] sm:$0xff pattern:$0x73625140]  ;;  %v848_v24 = vld [vmem:[%s1111_s3 + $0x128] sm:$0xff]  ;;  %v846_v26 = vld [vmem:[%s1111_s3 + $0x118] sm:$0xff] }
  0x19   :  { %558 = vmatpush.bf16.msra.mxu3 %v837_v31  ;;  %v61_v60 = vld.sshfl [vmem:[#allocation1 + $0x28] sm:$0xff pattern:$0x73625140]  ;;  %v71_v63 = vsub.f32 %v42_v49, %v59_v45  ;;  %v72_v0 = vsub.f32 %v43_v54, %v60_v59  ;;  %v835_v6 = vld [vmem:[%s1111_s3 + $0xc0] sm:$0xff]  ;;  %v854_v27 = vld [vmem:[%s1111_s3 + $0x158] sm:$0xff] }
  0x1a   :  { %520 = vmatpush.bf16.msra.mxu0 %v812_v33  ;;  %v73_v1 = vsub.f32 %v44_v55, %v61_v60  ;;  %v76_v2 = vmul.f32 %v74_v52, %v68_v56  ;;  %v77_v3 = vmul.f32 %v75_v53, %v69_v57  ;;  %v78_v4 = vmul.f32 %v74_v52, %v70_v58  ;;  %v856_v25 = vld [vmem:[%s1111_s3 + $0x168] sm:$0xff]  ;;  %v845_v36 = vld [vmem:[%s1111_s3 + $0x110] sm:$0xff]  ;;  %v843_v40 = vld [vmem:[%s1111_s3 + $0x100] sm:$0xff] }
  0x1b   :  { %533 = vmatpush.bf16.msra.mxu1 %v820_v38  ;;  %v79_v7 = vmul.f32 %v75_v53, %v71_v63  ;;  %v80_v8 = vmul.f32 %v74_v52, %v72_v0  ;;  %v853_v37 = vld [vmem:[%s1111_s3 + $0x150] sm:$0xff]  ;;  %v844_v38 = vld [vmem:[%s1111_s3 + $0x108] sm:$0xff]  ;;  %v851_v41 = vld [vmem:[%s1111_s3 + $0x140] sm:$0xff] }
  0x1c   :  { %546 = vmatpush.bf16.msra.mxu2 %v828_v39  ;;  %v81_v9 = vmul.f32 %v75_v53, %v73_v1  ;;  %v88_v10 = vrot.slane %v77_v3, 6  ;;  %v89_v11 = vrot.slane %v78_v4, 4  ;;  %v852_v39 = vld [vmem:[%s1111_s3 + $0x148] sm:$0xff]  ;;  %v860_v46 = vld [vmem:[%s1112_s4] ss:$0 sm:$0xff]  ;;  %s606_s4 = sshll.u32 %s1113_s5, 4  ;;  %s607_s4 = int_to_ptr.hbm [resolvable:$true] %s606_s4 }
  0x1d   :  { %559 = vmatpush.bf16.msra.mxu3 %v836_v42  ;;  %v90_v14 = vrot.slane %v79_v7, 2 }
  0x1e   :  { %521 = vmatpush.bf16.msra.mxu0 %v811_v50  ;;  %v91_v15 = vrot.slane %v81_v9, 6  ;;  %v93_v16 = vsel %vm92_vm1, %v76_v2, %v88_v10 }
  0x1f   :  { %534 = vmatpush.bf16.msra.mxu1 %v819_v51  ;;  %v95_v17 = vsel %vm94_vm2, %v89_v11, %v90_v14 }
  0x20   :  { %547 = vmatpush.bf16.msra.mxu2 %v827_v5  ;;  %v98_v20 = vsel %vm92_vm1, %v80_v8, %v91_v15  ;;  %v97_v21 = vsel %vm96_vm3, %v93_v16, %v95_v17 }
  0x21   :  { %560 = vmatpush.bf16.msra.mxu3 %v835_v6  ;;  %v102_v22 = vadd.f32 %v98_v20, %v989_v19  ;;  %v101_v23 = vadd.f32 %v97_v21, %v984_v18  ;;  %v847_v19 = vld [vmem:[%s1111_s3 + $0x120] sm:$0xff] }
  0x22   :  { %566 = vmatpush.bf16.msrb.mxu0 %v850_v61  ;;  %v855_v18 = vld [vmem:[%s1111_s3 + $0x160] sm:$0xff]  ;;  %s891_s3 = smov [#allocation2]  }
  0x23   :  { %579 = vmatpush.bf16.msrb.mxu1 %v858_v62  ;;  %107 = vst [vmem:[#allocation1 + $0x20] ss:$4 sm:$0xff] %v102_v22  ;;  %s604_s22 = sshll.u32 %s891_s3, 4  ;;  %s605_s22 = int_to_ptr.vmem [resolvable:$true] %s604_s22 }
  0x24   :  { %105 = vst [vmem:[#allocation1] ss:$4 sm:$0xff] %v101_v23 }
  0x26   :  { %567 = vmatpush.bf16.msrb.mxu0 %v849_v12 }
  0x27   :  { %580 = vmatpush.bf16.msrb.mxu1 %v857_v13 }
  0x2a   :  { %568 = vmatpush.bf16.msrb.mxu0 %v848_v24  ;;  %v112_v42 = vld.sshfl [vmem:[#allocation1 + $0x20] sm:$0xff pattern:$0x73625140]  ;;  %v113_v43 = vld.sshfl [vmem:[#allocation1 + $0x28] sm:$0xff pattern:$0x73625140] }
  0x2b   :  { %581 = vmatpush.bf16.msrb.mxu1 %v856_v25  ;;  %v108_v28 = vld.sshfl [vmem:[#allocation1] sm:$0xff pattern:$0x73625140]  ;;  %v109_v29 = vld.sshfl [vmem:[#allocation1 + $0x8] sm:$0xff pattern:$0x73625140]  ;;  %v124_v44 = vpack.c.bf16 %v112_v42, %v112_v42  ;;  %v125_v45 = vpack.c.bf16 %v113_v43, %v113_v43 }
  0x2c   :  { %v120_v30 = vpack.c.bf16 %v108_v28, %v108_v28  ;;  %v121_v31 = vpack.c.bf16 %v109_v29, %v109_v29  ;;  %v110_v32 = vld.sshfl [vmem:[#allocation1 + $0x10] sm:$0xff pattern:$0x73625140]  ;;  %v111_v33 = vld.sshfl [vmem:[#allocation1 + $0x18] sm:$0xff pattern:$0x73625140] }
  0x2d   :  { %v122_v34 = vpack.c.bf16 %v110_v32, %v110_v32  ;;  %v123_v35 = vpack.c.bf16 %v111_v33, %v111_v33 }
  0x2e   :  { %569 = vmatpush.bf16.msrb.mxu0 %v847_v19  ;;  %535 = vmatmul.bf16.vlgmr.msra.gmra.mxu1 %v121_v31 }
  0x2f   :  { %582 = vmatpush.bf16.msrb.mxu1 %v855_v18  ;;  %522 = vmatmul.bf16.vlgmr.msra.gmra.mxu0 %v120_v30 }
  0x30   :  { %548 = vmatmul.bf16.vlgmr.msra.gmra.mxu2 %v122_v34  ;;  %561 = vmatmul.bf16.vlgmr.msra.gmra.mxu3 %v123_v35 }
  0x32   :  { %570 = vmatpush.bf16.msrb.mxu0 %v846_v26 }
  0x33   :  { %583 = vmatpush.bf16.msrb.mxu1 %v854_v27 }
  0x36   :  { %571 = vmatpush.bf16.msrb.mxu0 %v845_v36 }
  0x37   :  { %584 = vmatpush.bf16.msrb.mxu1 %v853_v37 }
  0x3a   :  { %572 = vmatpush.bf16.msrb.mxu0 %v844_v38 }
  0x3b   :  { %585 = vmatpush.bf16.msrb.mxu1 %v852_v39 }
  0x3e   :  { %573 = vmatpush.bf16.msrb.mxu0 %v843_v40 }
  0x3f   :  { %586 = vmatpush.bf16.msrb.mxu1 %v851_v41 }
  0x41   :  { %574 = vmatmul.bf16.vlgmr.msrb.gmra.mxu0 %v124_v44 }
  0x42   :  { %587 = vmatmul.bf16.vlgmr.msrb.gmra.mxu1 %v125_v45 }
  0xab   :  { %v536_v48 = vpop.f32.mrf.mxu1 }
  0xac   :  { %v523_v47 = vpop.f32.mrf.mxu0 }
  0xad   :  { %v524_v49 = vadd.f32 %v860_v46, %v523_v47 }
  0xaf   :  { %v537_v52 = vadd.f32 %v536_v48, %v524_v49 }
  0xb3   :  { %v549_v50 = vpop.f32.mrf.mxu2  ;;  %v562_v51 = vpop.f32.mrf.mxu3 }
  0xb4   :  { %v525_v53 = vpop.f32.mrf.mxu0  ;;  %v538_v54 = vpop.f32.mrf.mxu1  ;;  %v550_v55 = vadd.f32 %v549_v50, %v537_v52 }
  0xb6   :  { %v563_v58 = vadd.f32 %v562_v51, %v550_v55 }
  0xbb   :  { %v551_v56 = vpop.f32.mrf.mxu2  ;;  %v564_v57 = vpop.f32.mrf.mxu3 }
  0xbe   :  { %v575_v59 = vpop.f32.mrf.mxu0 }
  0xbf   :  { %v588_v60 = vpop.f32.mrf.mxu1  ;;  %v576_v61 = vadd.f32 %v575_v59, %v563_v58 }
  0xc1   :  { %v589_v62 = vadd.f32 %v588_v60, %v576_v61 }
  0xc3   :  { %593 = vst.msk [vmem:[#allocation2] sm:$0x3] %vm592_vm4, %v589_v62 }
  0xc4   :  { %609 = dma.vmem_to_hbm [thread:$0]  %s605_s22, 32, %s607_s4, [#allocation3]  }
  0xc6   :  { %v577_v63 = vpop.f32.mrf.mxu0 }
  0xc7   :  { %v590_v0 = vpop.f32.mrf.mxu1 }
  0xc8   :  { %889 = dma.done.wait [#allocation3], 32  }
  0xc9   :  { %890 = vsyncadd [#allocation3], 4294967264 }
  0xca   :  { %618 = vsyncpa [#allocation3], 1 }

</bundles_post_ra>
